<compile_context>
chip_gen: v5e
topology: v5e:2x2
jax: 0.10.0
libtpu: 0.0.40
codegen_flags: <defaults>
</compile_context>

<pallas_src>
import functools

import jax
import jax.numpy as jnp
from jax import lax
from jax.experimental import pallas as pl
from jax.experimental.pallas import tpu as pltpu


def _fused_gap_kernel(a_ref, v_ref, a_out_ref, v_out_ref, *, tt, inv_a, inv_v):
    """Fused audio + video global-average-pool kernel.

    a_ref    : (tb, HWa, C)      audio feature block (constant along ti)
    v_ref    : (tb, tt, HWv, C)  video feature block
    a_out_ref: (tb, C) f32       audio mean (block constant along ti)
    v_out_ref: (tb, C) f32       video mean accumulator / output
    """
    ti = pl.program_id(1)

    @pl.when(ti == 0)
    def _():
        # Audio block is identical for every ti step: compute once.
        a_out_ref[...] = jnp.sum(a_ref[...].astype(jnp.float32), axis=1) * inv_a
        # Zero-init the video accumulator (accumulated directly in the
        # VMEM-resident f32 output block — no extra scratch).
        v_out_ref[...] = jnp.zeros_like(v_out_ref)

    tb, c = v_out_ref.shape

    # Stream the tt frames of this block one at a time: small (tb, C) f32
    # carry keeps vreg pressure flat; reduce hides under the dominant HBM DMA.
    def body(i, part):
        frame = v_ref[:, pl.ds(i, 1), :, :].astype(jnp.float32)   # (tb,1,HW,C)
        return part + jnp.sum(frame, axis=(1, 2))                 # (tb,C)

    part = lax.fori_loop(0, tt, body, jnp.zeros((tb, c), jnp.float32),
                         unroll=tt <= 8)
    v_out_ref[...] += part

    @pl.when(ti == pl.num_programs(1) - 1)
    def _():
        v_out_ref[...] *= inv_v


def _pick_tile(n, cap):
    """Largest divisor of n that is <= cap (>= 1)."""
    cap = max(1, min(n, cap))
    for t in range(cap, 0, -1):
        if n % t == 0:
            return t
    return 1


def _pick_batch_tile(b):
    """Batch tile: full B when B <= 8, else a multiple-of-8 divisor of B,
    capped at 32 and forced to leave >= 2 'parallel' steps (v7x megacore)."""
    if b <= 8:
        return b                      # output block equals the full dim -> valid
    assert b % 8 == 0, b              # wrapper pads B otherwise
    cap = 32
    if b >= 16:
        cap = min(cap, b // 2)        # >= 2 batch grid steps for v7x's 2 TCs
    cap = max(8, (cap // 8) * 8)
    for t in range(cap, 7, -8):
        if b % t == 0:
            return t
    return 8


def fused_global_avg_pool(audio_cl, video_cl, *, max_block_bytes=4 * 1024 * 1024):
    """Fused global mean pools.

    audio_cl: (B, HWa, C)     channels-last audio feature map
    video_cl: (B, T, HWv, C)  channels-last video feature map (T = fps)
    Returns (a_feature, v_feature), each (B, C) float32.
    """
    b, hwa, c = audio_cl.shape
    bv, t, hwv, cv = video_cl.shape
    assert bv == b and cv == c, (audio_cl.shape, video_cl.shape)

    # Pad B to a multiple of 8 only when needed (removes the tb=B blowup path).
    pad = (-b) % 8 if b > 8 else 0
    if pad:
        audio_cl = jnp.pad(audio_cl, ((0, pad), (0, 0), (0, 0)))
        video_cl = jnp.pad(video_cl, ((0, pad), (0, 0), (0, 0), (0, 0)))
    bp = b + pad

    tb = _pick_batch_tile(bp)

    # Size the frame tile so one (sublane/lane padded) video block is ~4 MiB:
    # double-buffered it stays well inside the 32 MiB VMEM limit set below.
    itemsize = jnp.dtype(video_cl.dtype).itemsize
    row_bytes = (-(-hwv // 8) * 8) * (-(-c // 128) * 128) * itemsize
    tt = _pick_tile(t, max(1, max_block_bytes // max(1, tb * row_bytes)))
    grid = (bp // tb, t // tt)

    kernel = functools.partial(_fused_gap_kernel, tt=tt,
                               inv_a=1.0 / float(hwa),
                               inv_v=1.0 / float(t * hwv))

    cost = pl.CostEstimate(
        flops=int(audio_cl.size + video_cl.size),
        transcendentals=0,
        bytes_accessed=int(audio_cl.size * jnp.dtype(audio_cl.dtype).itemsize
                           + video_cl.size * itemsize
                           + 2 * bp * c * 4))

    a_out, v_out = pl.pallas_call(
        kernel,
        out_shape=(jax.ShapeDtypeStruct((bp, c), jnp.float32),
                   jax.ShapeDtypeStruct((bp, c), jnp.float32)),
        grid_spec=pltpu.PrefetchScalarGridSpec(
            num_scalar_prefetch=0,
            grid=grid,
            in_specs=[
                pl.BlockSpec((tb, hwa, c), lambda bi, ti: (bi, 0, 0)),
                pl.BlockSpec((tb, tt, hwv, c), lambda bi, ti: (bi, ti, 0, 0)),
            ],
            out_specs=[
                pl.BlockSpec((tb, c), lambda bi, ti: (bi, 0)),
                pl.BlockSpec((tb, c), lambda bi, ti: (bi, 0)),
            ],
        ),
        compiler_params=pltpu.CompilerParams(
            dimension_semantics=("parallel", "arbitrary"),
            vmem_limit_bytes=32 * 1024 * 1024),
        cost_estimate=cost,
    )(audio_cl, video_cl)

    if pad:
        a_out = a_out[:b]
        v_out = v_out[:b]
    return a_out, v_out


def avgb_share_classifier_forward(audio_feat_map, video_feat_map, fps, *,
                                  channels_last=False):
    """Forward of AVGBShareClassifier given the backbone feature maps.

    channels_last=False (PyTorch-native):
        audio_feat_map: (B, C, Ha, Wa)      == audio_encoder.audio_net(audio)
        video_feat_map: (B*fps, C, Hv, Wv)  == video_encoder.video_net(video)
    channels_last=True (preferred on TPU, no relayout needed):
        audio_feat_map: (B, Ha, Wa, C); video_feat_map: (B*fps, Hv, Wv, C)
    Returns (a_feature, v_feature), each (B, C) float32.
    """
    if channels_last:
        b, ha, wa, c = audio_feat_map.shape
        a_cl = audio_feat_map.reshape(b, ha * wa, c)
        bt, hv, wv, cv = video_feat_map.shape
        v_cl = video_feat_map.reshape(bt // fps, fps, hv * wv, cv)
    else:
        # NCHW adapter: on TPU the backbone should emit NHWC so this transpose
        # folds into the producing conv instead of being an extra HBM pass.
        b, c, ha, wa = audio_feat_map.shape
        a_cl = jnp.transpose(audio_feat_map.reshape(b, c, ha * wa), (0, 2, 1))
        bt, cv, hv, wv = video_feat_map.shape
        v_cl = jnp.transpose(
            video_feat_map.reshape(bt // fps, fps, cv, hv * wv), (0, 1, 3, 2))
    return fused_global_avg_pool(a_cl, v_cl)


def _reference(audio_feat_map, video_feat_map, fps):
    a = jnp.mean(audio_feat_map.astype(jnp.float32), axis=(2, 3))
    bt, c, h, w = video_feat_map.shape
    b = bt // fps
    v = video_feat_map.astype(jnp.float32).reshape(b, fps, c, h, w)
    v = jnp.mean(v, axis=(1, 3, 4))
    return a, v


if __name__ == "__main__":
    # config: 'resnet18' backbones -> 512-channel feature maps, fps=2.
    B, fps, C = 2, 2, 512
    Ha, Wa = 4, 4   # synthetic spatial dims of the audio backbone output
    Hv, Wv = 4, 4   # synthetic spatial dims of the video backbone output

    key = jax.random.PRNGKey(0)
    ka, kv = jax.random.split(key)
    # Synthetic backbone outputs, kept bf16 in HBM (kernel accumulates in f32).
    audio_fm = jax.random.normal(ka, (B, C, Ha, Wa), jnp.float32).astype(jnp.bfloat16)
    video_fm = jax.random.normal(kv, (B * fps, C, Hv, Wv), jnp.float32).astype(jnp.bfloat16)

    # NCHW path (faithful to the PyTorch module interface).
    a_feat, v_feat = avgb_share_classifier_forward(audio_fm, video_fm, fps)
    a_feat = jax.block_until_ready(a_feat)
    v_feat = jax.block_until_ready(v_feat)

    a_ref, v_ref = _reference(audio_fm, video_fm, fps)
    assert a_feat.shape == (B, C), a_feat.shape
    assert v_feat.shape == (B, C), v_feat.shape
    assert jnp.allclose(a_feat, a_ref, rtol=1e-2, atol=1e-2), "audio feature mismatch"
    assert jnp.allclose(v_feat, v_ref, rtol=1e-2, atol=1e-2), "video feature mismatch"

    # Channels-last path (preferred TPU layout; same numbers, no relayout).
    audio_fm_cl = jnp.transpose(audio_fm, (0, 2, 3, 1))
    video_fm_cl = jnp.transpose(video_fm, (0, 2, 3, 1))
    a_feat2, v_feat2 = avgb_share_classifier_forward(
        audio_fm_cl, video_fm_cl, fps, channels_last=True)
    a_feat2 = jax.block_until_ready(a_feat2)
    v_feat2 = jax.block_until_ready(v_feat2)
    assert jnp.allclose(a_feat2, a_ref, rtol=1e-2, atol=1e-2), "audio (NHWC) mismatch"
    assert jnp.allclose(v_feat2, v_ref, rtol=1e-2, atol=1e-2), "video (NHWC) mismatch"

    print("KERNEL_OK")
</pallas_src>

<mosaic_0001>
module attributes {stable_mosaic.version = 11 : i64} {
  func.func @_fused_gap_kernel(%arg0: i32, %arg1: i32, %arg2: memref<2x16x512xbf16, #tpu.memory_space<vmem>>, %arg3: memref<2x2x16x512xbf16, #tpu.memory_space<vmem>>, %arg4: memref<2x512xf32, #tpu.memory_space<vmem>>, %arg5: memref<2x512xf32, #tpu.memory_space<vmem>>) attributes {dimension_semantics = [#tpu.dimension_semantics<parallel>, #tpu.dimension_semantics<arbitrary>], iteration_bounds = array<i64: 1, 1>, scalar_prefetch = 0 : i64, scratch_operands = 0 : i64, tpu.core_type = #tpu.core_type<tc>, window_params = [{transform_indices = @transform_0, window_bounds = array<i64: 2, 16, 512>}, {transform_indices = @transform_1, window_bounds = array<i64: 2, 2, 16, 512>}, {transform_indices = @transform_2, window_bounds = array<i64: 2, 512>}, {transform_indices = @transform_3, window_bounds = array<i64: 2, 512>}]} {
    %c0_i32 = arith.constant 0 : i32
    %0 = arith.cmpi eq, %arg1, %c0_i32 : i32
    %1 = arith.extui %0 : i1 to i32
    %c0_i32_0 = arith.constant 0 : i32
    %2 = arith.cmpi ne, %1, %c0_i32_0 : i32
    scf.if %2 {
      %c0_15 = arith.constant 0 : index
      %c0_16 = arith.constant 0 : index
      %c0_17 = arith.constant 0 : index
      %20 = vector.load %arg2[%c0_15, %c0_16, %c0_17] : memref<2x16x512xbf16, #tpu.memory_space<vmem>>, vector<2x16x512xbf16>
      %21 = arith.extf %20 : vector<2x16x512xbf16> to vector<2x16x512xf32>
      %cst_18 = arith.constant dense<0.000000e+00> : vector<2x512xf32>
      %22 = vector.multi_reduction <add>, %21, %cst_18 [1] : vector<2x16x512xf32> to vector<2x512xf32>
      %cst_19 = arith.constant 6.250000e-02 : f32
      %23 = vector.broadcast %cst_19 : f32 to vector<2x512xf32>
      %24 = arith.mulf %22, %23 : vector<2x512xf32>
      %c0_20 = arith.constant 0 : index
      %c0_21 = arith.constant 0 : index
      %25 = vector.load %arg4[%c0_20, %c0_21] : memref<2x512xf32, #tpu.memory_space<vmem>>, vector<2x512xf32>
      tpu.vector_store %arg4[%c0_20, %c0_21], %24 {strides = array<i32>} : memref<2x512xf32, #tpu.memory_space<vmem>>, vector<2x512xf32>,
      %cst_22 = arith.constant 0.000000e+00 : f32
      %26 = vector.broadcast %cst_22 : f32 to vector<2x512xf32>
      %c0_23 = arith.constant 0 : index
      %c0_24 = arith.constant 0 : index
      %27 = vector.load %arg5[%c0_23, %c0_24] : memref<2x512xf32, #tpu.memory_space<vmem>>, vector<2x512xf32>
      tpu.vector_store %arg5[%c0_23, %c0_24], %26 {strides = array<i32>} : memref<2x512xf32, #tpu.memory_space<vmem>>, vector<2x512xf32>,
    } else {
    }
    %cst = arith.constant 0.000000e+00 : f32
    %3 = vector.broadcast %cst : f32 to vector<2x512xf32>
    %c0_i32_1 = arith.constant 0 : i32
    %c0 = arith.constant 0 : index
    %4 = arith.index_cast %c0_i32_1 : i32 to index
    %c0_2 = arith.constant 0 : index
    %c0_3 = arith.constant 0 : index
    %5 = vector.load %arg3[%c0, %4, %c0_2, %c0_3] : memref<2x2x16x512xbf16, #tpu.memory_space<vmem>>, vector<2x1x16x512xbf16>
    %6 = arith.extf %5 : vector<2x1x16x512xbf16> to vector<2x1x16x512xf32>
    %cst_4 = arith.constant dense<0.000000e+00> : vector<2x512xf32>
    %7 = vector.multi_reduction <add>, %6, %cst_4 [1, 2] : vector<2x1x16x512xf32> to vector<2x512xf32>
    %8 = arith.addf %3, %7 : vector<2x512xf32>
    %c1_i32 = arith.constant 1 : i32
    %c0_5 = arith.constant 0 : index
    %9 = arith.index_cast %c1_i32 : i32 to index
    %c0_6 = arith.constant 0 : index
    %c0_7 = arith.constant 0 : index
    %10 = vector.load %arg3[%c0_5, %9, %c0_6, %c0_7] : memref<2x2x16x512xbf16, #tpu.memory_space<vmem>>, vector<2x1x16x512xbf16>
    %11 = arith.extf %10 : vector<2x1x16x512xbf16> to vector<2x1x16x512xf32>
    %cst_8 = arith.constant dense<0.000000e+00> : vector<2x512xf32>
    %12 = vector.multi_reduction <add>, %11, %cst_8 [1, 2] : vector<2x1x16x512xf32> to vector<2x512xf32>
    %13 = arith.addf %8, %12 : vector<2x512xf32>
    %c2_i32 = arith.constant 2 : i32
    %c0_9 = arith.constant 0 : index
    %c0_10 = arith.constant 0 : index
    %14 = vector.load %arg5[%c0_9, %c0_10] : memref<2x512xf32, #tpu.memory_space<vmem>>, vector<2x512xf32>
    %15 = arith.addf %14, %13 : vector<2x512xf32>
    %c0_11 = arith.constant 0 : index
    %c0_12 = arith.constant 0 : index
    %16 = vector.load %arg5[%c0_11, %c0_12] : memref<2x512xf32, #tpu.memory_space<vmem>>, vector<2x512xf32>
    tpu.vector_store %arg5[%c0_11, %c0_12], %15 {strides = array<i32>} : memref<2x512xf32, #tpu.memory_space<vmem>>, vector<2x512xf32>,
    %c0_i32_13 = arith.constant 0 : i32
    %17 = arith.cmpi eq, %arg1, %c0_i32_13 : i32
    %18 = arith.extui %17 : i1 to i32
    %c0_i32_14 = arith.constant 0 : i32
    %19 = arith.cmpi ne, %18, %c0_i32_14 : i32
    scf.if %19 {
      %c0_15 = arith.constant 0 : index
      %c0_16 = arith.constant 0 : index
      %20 = vector.load %arg5[%c0_15, %c0_16] : memref<2x512xf32, #tpu.memory_space<vmem>>, vector<2x512xf32>
      %cst_17 = arith.constant 3.125000e-02 : f32
      %21 = vector.broadcast %cst_17 : f32 to vector<2x512xf32>
      %22 = arith.mulf %20, %21 : vector<2x512xf32>
      %c0_18 = arith.constant 0 : index
      %c0_19 = arith.constant 0 : index
      %23 = vector.load %arg5[%c0_18, %c0_19] : memref<2x512xf32, #tpu.memory_space<vmem>>, vector<2x512xf32>
      tpu.vector_store %arg5[%c0_18, %c0_19], %22 {strides = array<i32>} : memref<2x512xf32, #tpu.memory_space<vmem>>, vector<2x512xf32>,
    } else {
    }
    return
  }
  func.func @transform_0(%arg0: i32, %arg1: i32) -> (i32, i32, i32) {
    %c0_i32 = arith.constant 0 : i32
    %c0_i32_0 = arith.constant 0 : i32
    %c0_i32_1 = arith.constant 0 : i32
    return %arg0, %c0_i32, %c0_i32_0 : i32, i32, i32
  }
  func.func @transform_1(%arg0: i32, %arg1: i32) -> (i32, i32, i32, i32) {
    %c0_i32 = arith.constant 0 : i32
    %c0_i32_0 = arith.constant 0 : i32
    %c0_i32_1 = arith.constant 0 : i32
    return %arg0, %arg1, %c0_i32, %c0_i32_0 : i32, i32, i32, i32
  }
  func.func @transform_2(%arg0: i32, %arg1: i32) -> (i32, i32) {
    %c0_i32 = arith.constant 0 : i32
    %c0_i32_0 = arith.constant 0 : i32
    return %arg0, %c0_i32 : i32, i32
  }
  func.func @transform_3(%arg0: i32, %arg1: i32) -> (i32, i32) {
    %c0_i32 = arith.constant 0 : i32
    %c0_i32_0 = arith.constant 0 : i32
    return %arg0, %c0_i32 : i32, i32
  }
}

</mosaic_0001>

<bundles_post_ra>
// kernel: tpu_custom_call.1
= control target key start
LH: loop header
LB: loop body
LE: loop exit
PB: predicated region body
PF: predicated region fallthrough
CT: control target
= control target key end

     0   :  { %9 = vsyncpa [#allocation3], 0  ;;  %s628_s0 = inlined_call_operand.hbm [shape: bf16[2,16,512], index: 0, kind: input, shape index: {}]   ;;  %s629_s1 = inlined_call_operand.hbm [shape: bf16[2,2,16,512], index: 1, kind: input, shape index: {}]   ;;  %s630_s2 = inlined_call_operand.hbm [shape: f32[2,512], index: 2, kind: output, shape index: {0}]   ;;  %s631_s3 = inlined_call_operand.hbm [shape: f32[2,512], index: 3, kind: output, shape index: {1}]  }
   0x1   :  { %10 = vsyncpa [#allocation6], 0 }
   0x2   :  { %11 = vsyncpa [#allocation4], 0 }
   0x3   :  { %12 = vsyncpa [#allocation9], 0  ;;  %s17_s14 = sshll.u32 %s628_s0, 4  ;;  %s546_s15 = smov [#allocation2]   ;;  %s18_s14 = int_to_ptr.hbm [resolvable:$true] %s17_s14 }
   0x4   :  { %s19_s16 = sshll.u32 %s546_s15, 4  ;;  %s30_s19 = sshll.u32 %s629_s1, 4  ;;  %s20_s16 = int_to_ptr.vmem [resolvable:$true] %s19_s16  ;;  %s31_s19 = int_to_ptr.hbm [resolvable:$true] %s30_s19 }
   0x5   :  { %s547_s20 = smov 256   ;;  %s548_s21 = smov 16  }
   0x6   :  { %25 = dma.hbm_to_vmem [thread:$0]  %s18_s14, 1024, %s20_s16, [#allocation3], %s547_s20, %s547_s20, %s548_s21  }
   0x7   :  { %s549_s22 = smov [#allocation5]  }
   0x8   :  { %s32_s23 = sshll.u32 %s549_s22, 4  ;;  %s33_s23 = int_to_ptr.vmem [resolvable:$true] %s32_s23 }
   0x9   :  { %38 = dma.hbm_to_vmem [thread:$0]  %s31_s19, 2048, %s33_s23, [#allocation6], %s547_s20, %s547_s20, %s548_s21  }
   0xa   :  { %538 = dma.done.wait [#allocation3], 1024  }
   0xb   :  { %539 = vsyncadd [#allocation3], 4294966272 }
   0xc   :  { %540 = dma.done.wait [#allocation6], 2048  }
   0xd   :  { %541 = vsyncadd [#allocation6], 4294965248  ;;  %v178_v0 = vld [vmem:[#allocation5] sm:$0xff]  ;;  %v179_v1 = vld [vmem:[#allocation5 + $0x8] sm:$0xff]  ;;  %vm153_vm0 = vcmask 1041408   ;;  %vm155_vm1 = vcmask 1045508  }
   0xe   :  { %v180_v2 = vld [vmem:[#allocation5 + $0x10] sm:$0xff]  ;;  %v181_v3 = vld [vmem:[#allocation5 + $0x18] sm:$0xff]  ;;  %v182_v4 = vld [vmem:[#allocation5 + $0x40] sm:$0xff]  ;;  %v186_v6 = vunpack.c.l.bf16 %v178_v0  ;;  %v187_v7 = vunpack.c.h.bf16 %v178_v0  ;;  %v188_v8 = vunpack.c.l.bf16 %v179_v1  ;;  %v189_v9 = vunpack.c.h.bf16 %v179_v1  ;;  %s550_s0 = smov [#allocation8]   ;;  %s419_s26 = sshll.u32 %s631_s3, 4  ;;  %s420_s26 = int_to_ptr.hbm [resolvable:$true] %s419_s26 }
   0xf   :  { %v183_v5 = vld [vmem:[#allocation5 + $0x48] sm:$0xff]  ;;  %v184_v10 = vld [vmem:[#allocation5 + $0x50] sm:$0xff]  ;;  %v185_v11 = vld [vmem:[#allocation5 + $0x58] sm:$0xff]  ;;  %v190_v12 = vunpack.c.l.bf16 %v180_v2  ;;  %v191_v13 = vunpack.c.h.bf16 %v180_v2  ;;  %v192_v14 = vunpack.c.l.bf16 %v181_v3  ;;  %v193_v15 = vunpack.c.h.bf16 %v181_v3  ;;  %s417_s1 = sshll.u32 %s550_s0, 4  ;;  %s551_s3 = smov [#allocation7]   ;;  %s418_s1 = int_to_ptr.vmem [resolvable:$true] %s417_s1 }
  0x10   :  { %v194_v16 = vunpack.c.l.bf16 %v182_v4  ;;  %v195_v17 = vunpack.c.h.bf16 %v182_v4  ;;  %v196_v18 = vunpack.c.l.bf16 %v183_v5  ;;  %v197_v19 = vunpack.c.h.bf16 %v183_v5  ;;  %s406_s27 = sshll.u32 %s551_s3, 4  ;;  %s408_s30 = sshll.u32 %s630_s2, 4  ;;  %s407_s27 = int_to_ptr.vmem [resolvable:$true] %s406_s27  ;;  %s409_s30 = int_to_ptr.hbm [resolvable:$true] %s408_s30 }
  0x11   :  { %v198_v20 = vunpack.c.l.bf16 %v184_v10  ;;  %v199_v21 = vunpack.c.h.bf16 %v184_v10  ;;  %v200_v22 = vunpack.c.l.bf16 %v185_v11  ;;  %v201_v23 = vunpack.c.h.bf16 %v185_v11 }
  0x12   :  { %v202_v24 = vadd.f32 %v190_v12, %v186_v6  ;;  %v209_v25 = vadd.f32 %v191_v13, %v187_v7  ;;  %v216_v26 = vadd.f32 %v192_v14, %v188_v8  ;;  %v223_v27 = vadd.f32 %v193_v15, %v189_v9  ;;  %v267_v8 = vld [vmem:[#allocation5 + $0x20] sm:$0xff]  ;;  %v268_v9 = vld [vmem:[#allocation5 + $0x28] sm:$0xff]  ;;  %v269_v14 = vld [vmem:[#allocation5 + $0x30] sm:$0xff] }
  0x13   :  { %v230_v28 = vadd.f32 %v198_v20, %v194_v16  ;;  %v237_v29 = vadd.f32 %v199_v21, %v195_v17  ;;  %v244_v30 = vadd.f32 %v200_v22, %v196_v18  ;;  %v251_v31 = vadd.f32 %v201_v23, %v197_v19  ;;  %v270_v15 = vld [vmem:[#allocation5 + $0x38] sm:$0xff]  ;;  %v271_v20 = vld [vmem:[#allocation5 + $0x60] sm:$0xff]  ;;  %v272_v21 = vld [vmem:[#allocation5 + $0x68] sm:$0xff] }
  0x14   :  { %v203_v32 = vrot.slane %v202_v24, 4  ;;  %v210_v33 = vrot.slane %v209_v25, 4  ;;  %v217_v34 = vrot.slane %v216_v26, 4  ;;  %v224_v35 = vrot.slane %v223_v27, 4  ;;  %v273_v22 = vld [vmem:[#allocation5 + $0x70] sm:$0xff]  ;;  %v274_v23 = vld [vmem:[#allocation5 + $0x78] sm:$0xff] }
  0x15   :  { %v231_v36 = vrot.slane %v230_v28, 4  ;;  %v238_v37 = vrot.slane %v237_v29, 4  ;;  %v245_v38 = vrot.slane %v244_v30, 4  ;;  %v252_v39 = vrot.slane %v251_v31, 4 }
  0x16   :  { %v204_v40 = vadd.f32 %v203_v32, %v202_v24  ;;  %v211_v41 = vadd.f32 %v210_v33, %v209_v25  ;;  %v218_v42 = vadd.f32 %v217_v34, %v216_v26  ;;  %v225_v43 = vadd.f32 %v224_v35, %v223_v27 }
  0x17   :  { %v232_v44 = vadd.f32 %v231_v36, %v230_v28  ;;  %v239_v45 = vadd.f32 %v238_v37, %v237_v29  ;;  %v246_v46 = vadd.f32 %v245_v38, %v244_v30  ;;  %v253_v47 = vadd.f32 %v252_v39, %v251_v31 }
  0x18   :  { %v205_v48 = vrot.slane %v204_v40, 2  ;;  %v212_v49 = vrot.slane %v211_v41, 2  ;;  %v219_v50 = vrot.slane %v218_v42, 2  ;;  %v226_v51 = vrot.slane %v225_v43, 2 }
  0x19   :  { %v233_v52 = vrot.slane %v232_v44, 2  ;;  %v240_v53 = vrot.slane %v239_v45, 2  ;;  %v247_v54 = vrot.slane %v246_v46, 2  ;;  %v254_v55 = vrot.slane %v253_v47, 2 }
  0x1a   :  { %v206_v56 = vadd.f32 %v205_v48, %v204_v40  ;;  %v213_v57 = vadd.f32 %v212_v49, %v211_v41  ;;  %v220_v58 = vadd.f32 %v219_v50, %v218_v42  ;;  %v227_v59 = vadd.f32 %v226_v51, %v225_v43 }
  0x1b   :  { %v234_v60 = vadd.f32 %v233_v52, %v232_v44  ;;  %v241_v61 = vadd.f32 %v240_v53, %v239_v45  ;;  %v248_v62 = vadd.f32 %v247_v54, %v246_v46  ;;  %v255_v63 = vadd.f32 %v254_v55, %v253_v47 }
  0x1c   :  { %v207_v0 = vrot.slane %v206_v56, 1  ;;  %v214_v1 = vrot.slane %v213_v57, 1  ;;  %v221_v2 = vrot.slane %v220_v58, 1  ;;  %v228_v3 = vrot.slane %v227_v59, 1 }
  0x1d   :  { %v235_v4 = vrot.slane %v234_v60, 1  ;;  %v242_v5 = vrot.slane %v241_v61, 1  ;;  %v249_v6 = vrot.slane %v248_v62, 1  ;;  %v256_v7 = vrot.slane %v255_v63, 1 }
  0x1e   :  { %v578_v10 = vadd.f32 %v207_v0, %v206_v56  ;;  %v580_v11 = vadd.f32 %v214_v1, %v213_v57  ;;  %v582_v12 = vadd.f32 %v221_v2, %v220_v58  ;;  %v584_v13 = vadd.f32 %v228_v3, %v227_v59 }
  0x1f   :  { %v586_v16 = vadd.f32 %v235_v4, %v234_v60  ;;  %v588_v17 = vadd.f32 %v242_v5, %v241_v61  ;;  %v590_v18 = vadd.f32 %v249_v6, %v248_v62  ;;  %v592_v19 = vadd.f32 %v256_v7, %v255_v63 }
  0x20   :  { %v275_v24 = vunpack.c.l.bf16 %v267_v8  ;;  %v276_v25 = vunpack.c.h.bf16 %v267_v8  ;;  %v277_v26 = vunpack.c.l.bf16 %v268_v9  ;;  %v278_v27 = vunpack.c.h.bf16 %v268_v9 }
  0x21   :  { %v279_v28 = vunpack.c.l.bf16 %v269_v14  ;;  %v280_v29 = vunpack.c.h.bf16 %v269_v14  ;;  %v281_v30 = vunpack.c.l.bf16 %v270_v15  ;;  %v282_v31 = vunpack.c.h.bf16 %v270_v15 }
  0x22   :  { %v283_v32 = vunpack.c.l.bf16 %v271_v20  ;;  %v284_v33 = vunpack.c.h.bf16 %v271_v20  ;;  %v285_v34 = vunpack.c.l.bf16 %v272_v21  ;;  %v286_v35 = vunpack.c.h.bf16 %v272_v21 }
  0x23   :  { %v287_v36 = vunpack.c.l.bf16 %v273_v22  ;;  %v288_v37 = vunpack.c.h.bf16 %v273_v22  ;;  %v289_v38 = vunpack.c.l.bf16 %v274_v23  ;;  %v290_v39 = vunpack.c.h.bf16 %v274_v23 }
  0x24   :  { %v291_v40 = vadd.f32 %v279_v28, %v275_v24  ;;  %v298_v41 = vadd.f32 %v280_v29, %v276_v25  ;;  %v305_v42 = vadd.f32 %v281_v30, %v277_v26  ;;  %v312_v43 = vadd.f32 %v282_v31, %v278_v27 }
  0x25   :  { %v319_v44 = vadd.f32 %v287_v36, %v283_v32  ;;  %v326_v45 = vadd.f32 %v288_v37, %v284_v33  ;;  %v333_v46 = vadd.f32 %v289_v38, %v285_v34  ;;  %v340_v47 = vadd.f32 %v290_v39, %v286_v35 }
  0x26   :  { %v292_v48 = vrot.slane %v291_v40, 4  ;;  %v299_v49 = vrot.slane %v298_v41, 4  ;;  %v306_v50 = vrot.slane %v305_v42, 4  ;;  %v313_v51 = vrot.slane %v312_v43, 4 }
  0x27   :  { %v320_v52 = vrot.slane %v319_v44, 4  ;;  %v327_v53 = vrot.slane %v326_v45, 4  ;;  %v334_v54 = vrot.slane %v333_v46, 4  ;;  %v341_v55 = vrot.slane %v340_v47, 4 }
  0x28   :  { %v293_v56 = vadd.f32 %v292_v48, %v291_v40  ;;  %v300_v57 = vadd.f32 %v299_v49, %v298_v41  ;;  %v307_v58 = vadd.f32 %v306_v50, %v305_v42  ;;  %v314_v59 = vadd.f32 %v313_v51, %v312_v43  ;;  %v52_v49 = vld [vmem:[#allocation2 + $0x8] sm:$0xff] }
  0x29   :  { %v321_v60 = vadd.f32 %v320_v52, %v319_v44  ;;  %v328_v61 = vadd.f32 %v327_v53, %v326_v45  ;;  %v335_v62 = vadd.f32 %v334_v54, %v333_v46  ;;  %v342_v63 = vadd.f32 %v341_v55, %v340_v47  ;;  %v51_v44 = vld [vmem:[#allocation2] sm:$0xff]  ;;  %v53_v54 = vld [vmem:[#allocation2 + $0x10] sm:$0xff] }
  0x2a   :  { %v294_v0 = vrot.slane %v293_v56, 2  ;;  %v301_v1 = vrot.slane %v300_v57, 2  ;;  %v308_v2 = vrot.slane %v307_v58, 2  ;;  %v315_v3 = vrot.slane %v314_v59, 2 }
  0x2b   :  { %v322_v4 = vrot.slane %v321_v60, 2  ;;  %v329_v5 = vrot.slane %v328_v61, 2  ;;  %v336_v6 = vrot.slane %v335_v62, 2  ;;  %v343_v7 = vrot.slane %v342_v63, 2 }
  0x2c   :  { %v295_v8 = vadd.f32 %v294_v0, %v293_v56  ;;  %v302_v9 = vadd.f32 %v301_v1, %v300_v57  ;;  %v309_v14 = vadd.f32 %v308_v2, %v307_v58  ;;  %v316_v15 = vadd.f32 %v315_v3, %v314_v59  ;;  %v56_v57 = vld [vmem:[#allocation2 + $0x28] sm:$0xff] }
  0x2d   :  { %vm157_vm2 = vcmask 1043456   ;;  %v323_v20 = vadd.f32 %v322_v4, %v321_v60  ;;  %v330_v21 = vadd.f32 %v329_v5, %v328_v61  ;;  %v337_v22 = vadd.f32 %v336_v6, %v335_v62  ;;  %v57_v61 = vld [vmem:[#allocation2 + $0x30] sm:$0xff]  ;;  %v58_v62 = vld [vmem:[#allocation2 + $0x38] sm:$0xff] }
  0x2e   :  { %v344_v23 = vadd.f32 %v343_v7, %v342_v63  ;;  %v296_v24 = vrot.slane %v295_v8, 1  ;;  %v303_v25 = vrot.slane %v302_v9, 1  ;;  %v310_v26 = vrot.slane %v309_v14, 1 }
  0x2f   :  { %v317_v27 = vrot.slane %v316_v15, 1  ;;  %v324_v28 = vrot.slane %v323_v20, 1  ;;  %v331_v29 = vrot.slane %v330_v21, 1  ;;  %v338_v30 = vrot.slane %v337_v22, 1 }
  0x30   :  { %v345_v31 = vrot.slane %v344_v23, 1  ;;  %vm167_vm3 = vcmask 1041409   ;;  %v297_v32 = vadd.f32 %v296_v24, %v295_v8  ;;  %v304_v33 = vadd.f32 %v303_v25, %v302_v9 }
  0x31   :  { %v311_v34 = vadd.f32 %v310_v26, %v309_v14  ;;  %v318_v35 = vadd.f32 %v317_v27, %v316_v15  ;;  %vm169_vm4 = vcmask 1043459   ;;  %v325_v36 = vadd.f32 %v324_v28, %v323_v20 }
  0x32   :  { %v332_v37 = vadd.f32 %v331_v29, %v330_v21  ;;  %v339_v38 = vadd.f32 %v338_v30, %v337_v22  ;;  %v346_v39 = vadd.f32 %v345_v31, %v344_v23  ;;  %vm171_vm5 = vcmask 1045509  }
  0x33   :  { %v347_v40 = vadd.f32 %v297_v32, %v578_v10  ;;  %v348_v41 = vadd.f32 %v304_v33, %v580_v11  ;;  %v349_v42 = vadd.f32 %v311_v34, %v582_v12  ;;  %v350_v43 = vadd.f32 %v318_v35, %v584_v13  ;;  %v54_v13 = vld [vmem:[#allocation2 + $0x18] sm:$0xff] }
  0x34   :  { %vm173_vm6 = vcmask 1047559   ;;  %v351_v45 = vadd.f32 %v325_v36, %v586_v16  ;;  %v352_v46 = vadd.f32 %v332_v37, %v588_v17  ;;  %v353_v47 = vadd.f32 %v339_v38, %v590_v18  ;;  %v55_v17 = vld [vmem:[#allocation2 + $0x20] sm:$0xff] }
  0x35   :  { %v354_v48 = vadd.f32 %v346_v39, %v592_v19  ;;  %v364_v50 = vrot.slane %v348_v41, 6  ;;  %v365_v51 = vrot.slane %v349_v42, 4  ;;  %v366_v10 = vrot.slane %v350_v43, 2 }
  0x36   :  { %v59_v52 = vunpack.c.l.bf16 %v51_v44  ;;  %v367_v11 = vrot.slane %v352_v46, 6  ;;  %v368_v53 = vrot.slane %v353_v47, 4  ;;  %v60_v55 = vunpack.c.h.bf16 %v51_v44 }
  0x37   :  { %v369_v12 = vrot.slane %v354_v48, 2  ;;  %v371_v56 = vsel %vm153_vm0, %v347_v40, %v364_v50  ;;  %v373_v16 = vsel %vm155_vm1, %v365_v51, %v366_v10  ;;  %v61_v18 = vunpack.c.l.bf16 %v52_v49 }
  0x38   :  { %v62_v58 = vunpack.c.h.bf16 %v52_v49  ;;  %v375_v19 = vsel %vm157_vm2, %v371_v56, %v373_v16  ;;  %v376_v59 = vsel %vm153_vm0, %v351_v45, %v367_v11  ;;  %v63_v63 = vunpack.c.l.bf16 %v53_v54 }
  0x39   :  { %v377_v60 = vsel %vm155_vm1, %v368_v53, %v369_v12  ;;  %v64_v1 = vunpack.c.h.bf16 %v53_v54  ;;  %v65_v2 = vunpack.c.l.bf16 %v54_v13  ;;  %v66_v3 = vunpack.c.h.bf16 %v54_v13 }
  0x3a   :  { %v378_v0 = vsel %vm157_vm2, %v376_v59, %v377_v60  ;;  %v67_v5 = vunpack.c.l.bf16 %v55_v17  ;;  %v68_v6 = vunpack.c.h.bf16 %v55_v17  ;;  %v69_v7 = vunpack.c.l.bf16 %v56_v57 }
  0x3b   :  { %v383_v4 = vrot.slane %v378_v0, 7  ;;  %v70_v8 = vunpack.c.h.bf16 %v56_v57  ;;  %v71_v9 = vunpack.c.l.bf16 %v57_v61  ;;  %v72_v14 = vunpack.c.h.bf16 %v57_v61 }
  0x3c   :  { %v73_v15 = vunpack.c.l.bf16 %v58_v62  ;;  %v74_v21 = vunpack.c.h.bf16 %v58_v62  ;;  %v75_v22 = vadd.f32 %v63_v63, %v59_v52  ;;  %v82_v23 = vadd.f32 %v64_v1, %v60_v55 }
  0x3d   :  { %v385_v20 = vsel %vm167_vm3, %v383_v4, %v375_v19  ;;  %v89_v25 = vadd.f32 %v65_v2, %v61_v18  ;;  %v96_v26 = vadd.f32 %v66_v3, %v62_v58  ;;  %v103_v27 = vadd.f32 %v71_v9, %v67_v5 }
  0x3e   :  { %v387_v24 = vsel %vm169_vm4, %v383_v4, %v385_v20  ;;  %v76_v29 = vrot.slane %v75_v22, 4  ;;  %v83_v30 = vrot.slane %v82_v23, 4  ;;  %v110_v31 = vadd.f32 %v72_v14, %v68_v6 }
  0x3f   :  { %v389_v28 = vsel %vm171_vm5, %v383_v4, %v387_v24  ;;  %v90_v33 = vrot.slane %v89_v25, 4  ;;  %v97_v34 = vrot.slane %v96_v26, 4  ;;  %v104_v35 = vrot.slane %v103_v27, 4 }
  0x40   :  { %v391_v32 = vsel %vm173_vm6, %v383_v4, %v389_v28  ;;  %v77_v36 = vadd.f32 %v76_v29, %v75_v22  ;;  %v84_v37 = vadd.f32 %v83_v30, %v82_v23  ;;  %v111_v38 = vrot.slane %v110_v31, 4 }
  0x41   :  { %v91_v39 = vadd.f32 %v90_v33, %v89_v25  ;;  %v98_v40 = vadd.f32 %v97_v34, %v96_v26  ;;  %v105_v41 = vadd.f32 %v104_v35, %v103_v27  ;;  %v117_v42 = vadd.f32 %v73_v15, %v69_v7 }
  0x42   :  { %v78_v43 = vrot.slane %v77_v36, 2  ;;  %v85_v44 = vrot.slane %v84_v37, 2  ;;  %v112_v45 = vadd.f32 %v111_v38, %v110_v31  ;;  %v124_v46 = vadd.f32 %v74_v21, %v70_v8 }
  0x43   :  { %v92_v47 = vrot.slane %v91_v39, 2  ;;  %v99_v48 = vrot.slane %v98_v40, 2  ;;  %v106_v49 = vrot.slane %v105_v41, 2  ;;  %v118_v50 = vrot.slane %v117_v42, 4 }
  0x44   :  { %v79_v51 = vadd.f32 %v78_v43, %v77_v36  ;;  %v86_v10 = vadd.f32 %v85_v44, %v84_v37  ;;  %v113_v52 = vrot.slane %v112_v45, 2  ;;  %v125_v11 = vrot.slane %v124_v46, 4 }
  0x45   :  { %v93_v53 = vadd.f32 %v92_v47, %v91_v39  ;;  %v100_v12 = vadd.f32 %v99_v48, %v98_v40  ;;  %v107_v54 = vadd.f32 %v106_v49, %v105_v41  ;;  %v119_v13 = vadd.f32 %v118_v50, %v117_v42 }
  0x46   :  { %v80_v55 = vrot.slane %v79_v51, 1  ;;  %v87_v56 = vrot.slane %v86_v10, 1  ;;  %v114_v16 = vadd.f32 %v113_v52, %v112_v45  ;;  %v126_v17 = vadd.f32 %v125_v11, %v124_v46 }
  0x47   :  { %v94_v57 = vrot.slane %v93_v53, 1  ;;  %v101_v18 = vrot.slane %v100_v12, 1  ;;  %v108_v58 = vrot.slane %v107_v54, 1  ;;  %v120_v19 = vrot.slane %v119_v13, 2 }
  0x48   :  { %v81_v59 = vadd.f32 %v80_v55, %v79_v51  ;;  %v88_v60 = vadd.f32 %v87_v56, %v86_v10  ;;  %v115_v61 = vrot.slane %v114_v16, 1  ;;  %v127_v62 = vrot.slane %v126_v17, 2 }
  0x49   :  { %v95_v63 = vadd.f32 %v94_v57, %v93_v53  ;;  %v102_v0 = vadd.f32 %v101_v18, %v100_v12  ;;  %v109_v1 = vadd.f32 %v108_v58, %v107_v54  ;;  %v121_v2 = vadd.f32 %v120_v19, %v119_v13 }
  0x4a   :  { %v116_v3 = vadd.f32 %v115_v61, %v114_v16  ;;  %v128_v4 = vadd.f32 %v127_v62, %v126_v17  ;;  %v132_v5 = vmul.f32 0.0625, %v88_v60  ;;  %v399_v15 = vmul.f32 0.03125, %v391_v32 }
  0x4b   :  { %v122_v6 = vrot.slane %v121_v2, 1  ;;  %v133_v7 = vmul.f32 0.0625, %v95_v63  ;;  %v134_v8 = vmul.f32 0.0625, %v102_v0  ;;  %v131_v21 = vmul.f32 0.0625, %v81_v59 }
  0x4c   :  { %v129_v9 = vrot.slane %v128_v4, 1  ;;  %v136_v14 = vmul.f32 0.0625, %v116_v3  ;;  %v135_v22 = vmul.f32 0.0625, %v109_v1  ;;  %v147_v23 = vrot.slane %v132_v5, 6  ;;  %400 = vst [vmem:[#allocation8] sm:$0xff] %v399_v15 }
  0x4d   :  { %v123_v20 = vadd.f32 %v122_v6, %v121_v2  ;;  %v148_v25 = vrot.slane %v133_v7, 4  ;;  %v149_v26 = vrot.slane %v134_v8, 2  ;;  %422 = dma.vmem_to_hbm [thread:$0]  %s418_s1, 128, %s420_s26, [#allocation9]  }
  0x4e   :  { %v130_v24 = vadd.f32 %v129_v9, %v128_v4  ;;  %v150_v27 = vrot.slane %v136_v14, 6  ;;  %v154_v33 = vsel %vm153_vm0, %v131_v21, %v147_v23 }
  0x4f   :  { %v137_v28 = vmul.f32 0.0625, %v123_v20  ;;  %v156_v32 = vsel %vm155_vm1, %v148_v25, %v149_v26 }
  0x50   :  { %v138_v29 = vmul.f32 0.0625, %v130_v24  ;;  %v159_v34 = vsel %vm153_vm0, %v135_v22, %v150_v27  ;;  %v158_v36 = vsel %vm157_vm2, %v154_v33, %v156_v32 }
  0x51   :  { %v151_v30 = vrot.slane %v137_v28, 4 }
  0x52   :  { %v152_v31 = vrot.slane %v138_v29, 2 }
  0x54   :  { %v160_v35 = vsel %vm155_vm1, %v151_v30, %v152_v31 }
  0x55   :  { %v161_v37 = vsel %vm157_vm2, %v159_v34, %v160_v35 }
  0x56   :  { %v166_v38 = vrot.slane %v161_v37, 7 }
  0x58   :  { %v168_v39 = vsel %vm167_vm3, %v166_v38, %v158_v36 }
  0x59   :  { %v170_v40 = vsel %vm169_vm4, %v166_v38, %v168_v39 }
  0x5a   :  { %v172_v41 = vsel %vm171_vm5, %v166_v38, %v170_v40 }
  0x5b   :  { %v174_v42 = vsel %vm173_vm6, %v166_v38, %v172_v41 }
  0x5c   :  { %176 = vst [vmem:[#allocation7] sm:$0xff] %v174_v42 }
  0x5d   :  { %411 = dma.vmem_to_hbm [thread:$0]  %s407_s27, 128, %s409_s30, [#allocation4]  }
  0x5e   :  { %542 = dma.done.wait [#allocation4], 128  }
  0x5f   :  { %543 = vsyncadd [#allocation4], 4294967168 }
  0x60   :  { %544 = dma.done.wait [#allocation9], 128  }
  0x61   :  { %545 = vsyncadd [#allocation9], 4294967168 }
  0x62   :  { %431 = vsyncpa [#allocation3], 1 }
  0x63   :  { %432 = vsyncpa [#allocation6], 1 }
  0x64   :  { %433 = vsyncpa [#allocation4], 1 }
  0x65   :  { %434 = vsyncpa [#allocation9], 1 }

</bundles_post_ra>
